<compile_context>
chip_gen: v7x
topology: tpu7x:2x2x1
jax: 0.10.0
libtpu: 0.0.40
codegen_flags: <defaults>
</compile_context>

<pallas_src>
import jax
import jax.numpy as jnp
from jax.experimental import pallas as pl
from jax.experimental.pallas import tpu as pltpu


def _merge_gemm_kernel(xt_ref, w_ref, b_ref, ot_ref):
    # xt_ref: (K, TM)  patches^T tile (lane-dense streaming input)
    # w_ref : (O, K)   conv weight as a dense matrix (VMEM-resident)
    # b_ref : (O, 1)   bias in f32 (VMEM-resident)
    # ot_ref: (O, TM)  out^T tile (lane-dense store)
    acc = jnp.dot(w_ref[...], xt_ref[...], preferred_element_type=jnp.float32)
    ot_ref[...] = (acc + b_ref[...]).astype(ot_ref.dtype)


def _choose_tile_m(M, target_tm):
    """Lane-dense M tile: large (amortize ~0.35us/step overhead) but keep
    >= 2 grid steps when M allows, so v7x megacore can split the grid."""
    n128 = pl.cdiv(M, 128)
    if n128 <= 1:
        return M                      # full-array block (equals the array dim)
    tm = min(target_tm, 128 * n128)
    tm = max(128, (tm // 128) * 128)  # keep the lane dim a multiple of 128
    if pl.cdiv(M, tm) < 2:
        tm = 128 * pl.cdiv(n128, 2)   # force at least 2 parallel steps
    return tm


def _merge_gemm(xt, w_mat, b_col, *, out_dtype, target_tm):
    """out^T = w_mat @ xt + b_col.  xt: (K, M), w_mat: (O, K), b_col: (O, 1)."""
    K, M = xt.shape
    O = w_mat.shape[0]
    tm = _choose_tile_m(M, target_tm)
    grid_m = pl.cdiv(M, tm)           # ragged last block handled by Pallas

    return pl.pallas_call(
        _merge_gemm_kernel,
        out_shape=jax.ShapeDtypeStruct((O, M), out_dtype),
        grid_spec=pltpu.PrefetchScalarGridSpec(
            num_scalar_prefetch=0,
            grid=(grid_m,),
            in_specs=[
                # Streaming, lane-dense activation tile.
                pl.BlockSpec((K, tm), lambda i: (0, i)),
                # Constant-index weight / bias: stay resident across steps.
                pl.BlockSpec((O, K), lambda i: (0, 0)),
                pl.BlockSpec((O, 1), lambda i: (0, 0)),
            ],
            out_specs=pl.BlockSpec((O, tm), lambda i: (0, i)),
        ),
        compiler_params=pltpu.CompilerParams(
            dimension_semantics=("parallel",)),
    )(xt, w_mat, b_col)


def patch_merge(x_nchw, weight, bias, *, window_size=2, target_tm=4096,
                compute_dtype=None):
    """Equivalent of nn.Conv2d(C, ws*C, kernel_size=ws, stride=ws,
    padding=(ws-1)//2) applied to NCHW input.

    x_nchw : (N, C, H, W)
    weight : (O, C, ws, ws) with O = ws * C   (PyTorch conv weight layout)
    bias   : (O,)
    compute_dtype: optionally jnp.bfloat16 to halve HBM traffic on v5e/v6e/v7x;
        accumulation and bias-add remain f32.
    returns: (N, O, H_out, W_out)
    """
    ws = window_size
    pad = (ws - 1) // 2
    N, C, H, W = x_nchw.shape
    O = weight.shape[0]
    out_dtype = x_nchw.dtype

    if pad > 0:
        x_nchw = jnp.pad(x_nchw, ((0, 0), (0, 0), (pad, pad), (pad, pad)))
    Hp, Wp = x_nchw.shape[2], x_nchw.shape[3]
    Ho = (Hp - ws) // ws + 1
    Wo = (Wp - ws) // ws + 1
    # Drop trailing rows/cols the strided conv never touches.
    x_nchw = x_nchw[:, :, : Ho * ws, : Wo * ws]

    K = C * ws * ws
    M = N * Ho * Wo

    # patches^T in (K, M) order: K = (C, kh, kw) matches the conv-weight
    # flattening; M = (N, ho, wo).  Single fused XLA pad+reshape+transpose.
    xt = x_nchw.reshape(N, C, Ho, ws, Wo, ws)
    xt = xt.transpose(1, 3, 5, 0, 2, 4).reshape(K, M)
    w_mat = weight.reshape(O, K)
    b_col = bias.reshape(O, 1).astype(jnp.float32)

    if compute_dtype is not None:
        xt = xt.astype(compute_dtype)
        w_mat = w_mat.astype(compute_dtype)

    out_t = _merge_gemm(xt, w_mat, b_col, out_dtype=out_dtype,
                        target_tm=target_tm)                     # (O, M)
    # (O, N, Ho, Wo) -> (N, O, Ho, Wo): cheap leading-dim swap, no lane shuffle.
    return out_t.reshape(O, N, Ho, Wo).transpose(1, 0, 2, 3)


def _reference_conv(x_nchw, weight, bias, *, window_size=2):
    ws = window_size
    pad = (ws - 1) // 2
    out = jax.lax.conv_general_dilated(
        x_nchw, weight,
        window_strides=(ws, ws),
        padding=((pad, pad), (pad, pad)),
        dimension_numbers=("NCHW", "OIHW", "NCHW"),
    )
    return out + bias.reshape(1, -1, 1, 1)


if __name__ == "__main__":
    # Module config: channels=4, window_size=2 -> Conv2d(4, 8, k=2, s=2, p=0)
    N, C, H, W = 2, 4, 16, 16
    ws = 2
    O = ws * C

    key = jax.random.PRNGKey(0)
    kx, kw, kb = jax.random.split(key, 3)
    x = jax.random.normal(kx, (N, C, H, W), dtype=jnp.float32)
    # Deterministic synthetic parameters (PyTorch conv weight shape (O, C, ws, ws)).
    bound = 1.0 / (C * ws * ws) ** 0.5
    weight = jax.random.uniform(kw, (O, C, ws, ws), jnp.float32, -bound, bound)
    bias = jax.random.uniform(kb, (O,), jnp.float32, -bound, bound)

    out = jax.block_until_ready(patch_merge(x, weight, bias, window_size=ws))
    ref = jax.block_until_ready(_reference_conv(x, weight, bias, window_size=ws))

    assert out.shape == ref.shape == (N, O, H // ws, W // ws), out.shape
    assert jnp.allclose(out, ref, rtol=2e-2, atol=2e-2), float(
        jnp.max(jnp.abs(out - ref)))

    print("KERNEL_OK")
</pallas_src>

<mosaic_0001>
module attributes {stable_mosaic.version = 11 : i64} {
  func.func @_merge_gemm_kernel(%arg0: i32, %arg1: memref<16x128xf32, #tpu.memory_space<vmem>>, %arg2: memref<8x16xf32, #tpu.memory_space<vmem>>, %arg3: memref<8x1xf32, #tpu.memory_space<vmem>>, %arg4: memref<8x128xf32, #tpu.memory_space<vmem>>) attributes {dimension_semantics = [#tpu.dimension_semantics<parallel>], iteration_bounds = array<i64: 1>, scalar_prefetch = 0 : i64, scratch_operands = 0 : i64, tpu.core_type = #tpu.core_type<tc>, window_params = [{transform_indices = @transform_0, window_bounds = array<i64: 16, 128>}, {pipeline_mode = #tpu.pipeline_mode<synchronous>, transform_indices = @transform_1, window_bounds = array<i64: 8, 16>}, {pipeline_mode = #tpu.pipeline_mode<synchronous>, transform_indices = @transform_2, window_bounds = array<i64: 8, 1>}, {transform_indices = @transform_3, window_bounds = array<i64: 8, 128>}]} {
    %c0 = arith.constant 0 : index
    %c0_0 = arith.constant 0 : index
    %0 = vector.load %arg2[%c0, %c0_0] : memref<8x16xf32, #tpu.memory_space<vmem>>, vector<8x16xf32>
    %c0_1 = arith.constant 0 : index
    %c0_2 = arith.constant 0 : index
    %1 = vector.load %arg1[%c0_1, %c0_2] : memref<16x128xf32, #tpu.memory_space<vmem>>, vector<16x128xf32>
    %cst = arith.constant dense<0.000000e+00> : vector<8x128xf32>
    %2 = tpu.matmul %0, %1, %cst {dimension_numbers = #tpu.dot_dimension_numbers<[1], [0], [0], [1], [0, 0, 1, 1], [], []>} : vector<8x16xf32>, vector<16x128xf32>, vector<8x128xf32> -> vector<8x128xf32>
    %c0_3 = arith.constant 0 : index
    %c0_4 = arith.constant 0 : index
    %3 = vector.load %arg3[%c0_3, %c0_4] : memref<8x1xf32, #tpu.memory_space<vmem>>, vector<8x1xf32>
    %4 = vector.broadcast %3 : vector<8x1xf32> to vector<8x128xf32>
    %5 = arith.addf %2, %4 : vector<8x128xf32>
    %c0_5 = arith.constant 0 : index
    %c0_6 = arith.constant 0 : index
    %6 = vector.load %arg4[%c0_5, %c0_6] : memref<8x128xf32, #tpu.memory_space<vmem>>, vector<8x128xf32>
    tpu.vector_store %arg4[%c0_5, %c0_6], %5 {strides = array<i32>} : memref<8x128xf32, #tpu.memory_space<vmem>>, vector<8x128xf32>,
    return
  }
  func.func @transform_0(%arg0: i32) -> (i32, i32) {
    %c0_i32 = arith.constant 0 : i32
    %c0_i32_0 = arith.constant 0 : i32
    return %c0_i32, %arg0 : i32, i32
  }
  func.func @transform_1(%arg0: i32) -> (i32, i32) {
    %c0_i32 = arith.constant 0 : i32
    %c0_i32_0 = arith.constant 0 : i32
    %c0_i32_1 = arith.constant 0 : i32
    return %c0_i32, %c0_i32_0 : i32, i32
  }
  func.func @transform_2(%arg0: i32) -> (i32, i32) {
    %c0_i32 = arith.constant 0 : i32
    %c0_i32_0 = arith.constant 0 : i32
    %c0_i32_1 = arith.constant 0 : i32
    return %c0_i32, %c0_i32_0 : i32, i32
  }
  func.func @transform_3(%arg0: i32) -> (i32, i32) {
    %c0_i32 = arith.constant 0 : i32
    %c0_i32_0 = arith.constant 0 : i32
    return %c0_i32, %arg0 : i32, i32
  }
}

</mosaic_0001>

<bundles_post_ra>
// kernel: tpu_custom_call.1
= control target key start
LH: loop header
LB: loop body
LE: loop exit
PB: predicated region body
PF: predicated region fallthrough
CT: control target
= control target key end

     0   :  { %8 = vsyncpa [#allocation3], 0  ;;  %s257_s0 = inlined_call_operand.hbm [shape: f32[16,128], index: 0, kind: input, shape index: {}]   ;;  %s258_s1 = inlined_call_operand.vmem [shape: f32[8,16], index: 1, kind: input, shape index: {}]   ;;  %s259_s2 = inlined_call_operand.vmem [shape: f32[8,1], index: 2, kind: input, shape index: {}]   ;;  %s260_s3 = inlined_call_operand.hbm [shape: f32[8,128], index: 3, kind: output, shape index: {}]  }
   0x1   :  { %9 = vsyncpa [#allocation4], 0  ;;  %s199_s12 = smov [#allocation2]   ;;  %s151_s16 = scalar_lea.hbm %s257_s0, 256 }
   0x2   :  { %s15_s13 = sshll.u32 %s199_s12, 4  ;;  %p152_p0 = scmp.ne.s32.totalorder %s257_s0, %s151_s16  ;;  %s16_s13 = int_to_ptr.vmem [resolvable:$true] %s15_s13 }
   0x3   :  { %p155_p1 = scmp.lt.u32.totalorder %s151_s16, %s257_s0 }
   0x5   :  { %p157_p2 = pnand %p155_p1, %p152_p0 }
   0x7   :  { %160 = shalt.err (!%p157_p2)
}
   0x8   :  { %s161_s21 = scalar_lea.vmem %s16_s13, 256  ;;  %p166_p4 = scmp.lt.s32.totalorder %s16_s13, %s16_s13 }
   0x9   :  { %p162_p3 = scmp.ne.s32.totalorder %s16_s13, %s161_s21  ;;  %p167_p5 = scmp.lt.s32.totalorder %s161_s21, %s161_s21 }
   0xb   :  { %p168_p6 = por %p167_p5, %p166_p4 }
   0xd   :  { %p169_p7 = pnand %p168_p6, %p162_p3 }
   0xf   :  { %172 = shalt.err (!%p169_p7)
}
  0x10   :  { %s200_s22 = smov 128   ;;  %s201_s23 = smov 8  }
  0x11   :  { %21 = dma.hbm_to_vmem [thread:$0]  %s257_s0, 256, %s16_s13, [#allocation3], %s200_s22, %s200_s22, %s201_s23  }
  0x12   :  { %195 = dma.done.wait [#allocation3], 256  }
  0x13   :  { %196 = vsyncadd [#allocation3], 4294967040  ;;  %v202_v0 = vmov 0.0|0.0   ;;  %vm203_vm0 = vmmov 0   ;;  %v204_v1 = vmov 0.0   ;;  %v205_v2 = vmov 0  }
  0x14   :  { %139 = vmatprep.subr.bf16.mxu0 %v202_v0  ;;  %136 = vmatprep.mubr.msk.f32.mxu0 %vm203_vm0, %v204_v1  ;;  %v30_v3 = vld [vmem:[#allocation2] sm:$0xff]  ;;  %v31_v4 = vld [vmem:[#allocation2 + $0x8] sm:$0xff]  ;;  %vm38_vm1 = vcmask 130048   ;;  %s206_s29 = smov [#allocation5]  }
  0x15   :  { %150 = vset.pattern.permute.xlu0 %v205_v2  ;;  %v140_v5 = vpack.c.bf16 %v31_v4, %v30_v3  ;;  %v32_v6 = vld [vmem:[%s259_s2] sm:$0xff]  ;;  %s119_s30 = sshll.u32 %s206_s29, 4  ;;  %s120_s30 = int_to_ptr.vmem [resolvable:$true] %s119_s30 }
  0x16   :  { %35 = vperm.xlu0 %150, %v32_v6   ;;  %v29_v7 = vld [vmem:[%s258_s1] sm:$0xff]  ;;  %s173_s4 = scalar_lea.vmem %s120_s30, 128  ;;  %p178_p9 = scmp.lt.s32.totalorder %s120_s30, %s120_s30 }
  0x17   :  { %141 = vmatpush3.bf16.msra.mxu0 %v140_v5  ;;  %p174_p8 = scmp.ne.s32.totalorder %s120_s30, %s173_s4  ;;  %p179_p10 = scmp.lt.s32.totalorder %s173_s4, %s173_s4 }
  0x19   :  { %p180_p11 = por %p179_p10, %p178_p9 }
  0x1a   :  { %137 = vmatmul.mubr.msk.f32.vlgmr.msra.gmra.mrb[0].mxu0 %vm38_vm1, %v29_v7 }
  0x1b   :  { %p181_p12 = pnand %p180_p11, %p174_p8 }
  0x95   :  { %v36_v8 = vpop.permute.xlu0 %35 }
  0xed   :  { %v108_v9 = vpop.f32.mrb[0].mxu0 }
  0xee   :  { %v109_v10 = vadd.f32 %v108_v9, %v36_v8  ;;  %v138_v11 = vpop.f32.mrb[1].mxu0 }
  0xf0   :  { %112 = vst [vmem:[#allocation5] sm:$0xff] %v109_v10 }
  0xf1   :  { %184 = shalt.err (!%p181_p12)
}
  0xf2   :  { %s185_s1 = scalar_lea.hbm %s260_s3, 128 }
  0xf3   :  { %p186_p13 = scmp.ne.s32.totalorder %s260_s3, %s185_s1  ;;  %p189_p0 = scmp.lt.u32.totalorder %s185_s1, %s260_s3 }
  0xf5   :  { %p191_p1 = pnand %p189_p0, %p186_p13 }
  0xf7   :  { %194 = shalt.err (!%p191_p1)
}
  0xf8   :  { %122 = dma.vmem_to_hbm [thread:$0]  %s120_s30, 128, %s260_s3, [#allocation4]  }
  0xf9   :  { %197 = dma.done.wait [#allocation4], 128  }
  0xfa   :  { %198 = vsyncadd [#allocation4], 4294967168 }
  0xfb   :  { %126 = vsyncpa [#allocation3], 1 }
  0xfc   :  { %127 = vsyncpa [#allocation4], 1 }

</bundles_post_ra>
